<compile_context>
chip_gen: v6e
topology: v6e:2x2x1
jax: 0.10.0
libtpu: 0.0.40
codegen_flags: <defaults>
</compile_context>

<pallas_src>
import jax
import jax.numpy as jnp
from jax.experimental import pallas as pl
from jax.experimental.pallas import tpu as pltpu

F_IN = 99                       # scatter-transform output features
HID1, HID2, HID3, EMB = 128, 64, 64, 32


def _scatternet_mlp_kernel(h_ref,
                           w1_ref, b1_ref,
                           w2_ref, b2_ref,
                           w3_ref, b3_ref,
                           we_ref, be_ref,
                           wcf_ref, bcf_ref,
                           emb_ref, out_ref):
    def lrelu(x):
        return jnp.where(x > 0, x, 0.01 * x)

    def dense(x_f32, w_ref, b_ref):
        # bf16 MXU operands, f32 accumulation, f32 bias add.
        return (jnp.dot(x_f32.astype(w_ref.dtype), w_ref[...],
                        preferred_element_type=jnp.float32)
                + b_ref[...])

    # h = act(scatter(data)); raw f32 [tile_n, 99] read straight from HBM,
    # bf16 cast happens on-chip inside dense() right before the MXU.
    h = lrelu(h_ref[...])

    h = lrelu(dense(h, w1_ref, b1_ref))   # linear1 + dropout(p=0) + act
    h = lrelu(dense(h, w2_ref, b2_ref))   # linear2 + dropout(p=0) + act
    h = dense(h, w3_ref, b3_ref)          # linear3 (no act before embedding)

    emb = dense(h, we_ref, be_ref)        # embedding_layer
    out = dense(h, wcf_ref, bcf_ref)      # classifier folded: h3 @ (We@Wc) + (be@Wc + bc)

    emb_ref[...] = emb.astype(emb_ref.dtype)
    out_ref[...] = out.astype(out_ref.dtype)


def prepare_params(params):
    """One-time cast/fold of weights to kernel dtypes (do NOT call per step).

    Folds the classifier through the embedding layer in f32:
      out = emb @ Wc + bc = h3 @ (We @ Wc) + (be @ Wc + bc)
    """
    wc_fold = params["we"] @ params["wc"]                     # [HID3, C] f32
    bc_fold = params["be"] @ params["wc"] + params["bc"]      # [1, C]   f32
    return {
        "w1": params["w1"].astype(jnp.bfloat16),
        "w2": params["w2"].astype(jnp.bfloat16),
        "w3": params["w3"].astype(jnp.bfloat16),
        "we": params["we"].astype(jnp.bfloat16),
        "wcf": wc_fold.astype(jnp.bfloat16),
        "b1": params["b1"].astype(jnp.float32),
        "b2": params["b2"].astype(jnp.float32),
        "b3": params["b3"].astype(jnp.float32),
        "be": params["be"].astype(jnp.float32),
        "bcf": bc_fold.astype(jnp.float32),
    }


def scatternet_forward(h, prepped, *, tile_n=1024):
    """h: [N, 99] scatter-transform output (f32); prepped: prepare_params() output.
    Returns (embedding [N, 32] f32, output [N, num_classes] f32)."""
    N = h.shape[0]
    C = prepped["bcf"].shape[-1]

    def rup8(x):
        return ((x + 7) // 8) * 8

    # Clamp tile to the (8-row-rounded) problem size; then cap it so the grid
    # has >= 2 balanced steps whenever possible (v7x megacore sharding).
    tile_n = min(tile_n, rup8(max(N, 8)))
    if N > 8:
        tile_n = min(tile_n, rup8(pl.cdiv(N, 2)))
    grid = (pl.cdiv(N, tile_n),)

    def row_spec(width):                      # tiled over the row grid
        return pl.BlockSpec((tile_n, width), lambda i: (i, 0))

    def resident_spec(shape):                 # VMEM-resident across grid steps
        return pl.BlockSpec(shape, lambda i: (0, 0))

    in_specs = [
        row_spec(F_IN),                                           # h (raw f32)
        resident_spec((F_IN, HID1)), resident_spec((1, HID1)),    # w1, b1
        resident_spec((HID1, HID2)), resident_spec((1, HID2)),    # w2, b2
        resident_spec((HID2, HID3)), resident_spec((1, HID3)),    # w3, b3
        resident_spec((HID3, EMB)),  resident_spec((1, EMB)),     # we, be
        resident_spec((HID3, C)),    resident_spec((1, C)),       # wc', bc' (folded)
    ]
    out_specs = (row_spec(EMB), row_spec(C))

    mm = (F_IN * HID1 + HID1 * HID2 + HID2 * HID3 + HID3 * EMB + HID3 * C)
    flops = 2 * N * mm
    weight_bytes = 2 * mm + 4 * (HID1 + HID2 + HID3 + EMB + C)
    bytes_accessed = N * (F_IN * 4 + (EMB + C) * 4) + weight_bytes

    return pl.pallas_call(
        _scatternet_mlp_kernel,
        grid=grid,
        out_shape=(
            jax.ShapeDtypeStruct((N, EMB), jnp.float32),  # embedding
            jax.ShapeDtypeStruct((N, C), jnp.float32),    # classifier output
        ),
        in_specs=in_specs,
        out_specs=out_specs,
        compiler_params=pltpu.CompilerParams(
            dimension_semantics=("parallel",)),
        cost_estimate=pl.CostEstimate(
            flops=flops, transcendentals=0, bytes_accessed=bytes_accessed),
    )(h, prepped["w1"], prepped["b1"], prepped["w2"], prepped["b2"],
      prepped["w3"], prepped["b3"], prepped["we"], prepped["be"],
      prepped["wcf"], prepped["bcf"])


def scatternet_reference(h, params):
    """Pure-JAX reference (f32) of the same forward pass (unfolded classifier)."""
    def lrelu(x):
        return jnp.where(x > 0, x, 0.01 * x)
    x = lrelu(h)
    x = lrelu(x @ params["w1"] + params["b1"])
    x = lrelu(x @ params["w2"] + params["b2"])
    x = x @ params["w3"] + params["b3"]
    emb = x @ params["we"] + params["be"]
    out = emb @ params["wc"] + params["bc"]
    return emb, out


def init_params(key, num_classes=1):
    """Deterministic PyTorch-style Linear init: U(-1/sqrt(fan_in), 1/sqrt(fan_in)).
    Weights stored as [in, out]; biases as [1, out] for lane-friendly broadcast."""
    dims = [(F_IN, HID1, "1"), (HID1, HID2, "2"), (HID2, HID3, "3"),
            (HID3, EMB, "e"), (EMB, num_classes, "c")]
    params = {}
    for (fan_in, fan_out, tag) in dims:
        key, kw, kb = jax.random.split(key, 3)
        bound = 1.0 / (fan_in ** 0.5)
        params[f"w{tag}"] = jax.random.uniform(
            kw, (fan_in, fan_out), jnp.float32, -bound, bound)
        params[f"b{tag}"] = jax.random.uniform(
            kb, (1, fan_out), jnp.float32, -bound, bound)
    return params


if __name__ == "__main__":
    key = jax.random.PRNGKey(0)
    k_h, k_p = jax.random.split(key)

    N = 24  # small number of nodes / pooled graphs
    h = jax.random.normal(k_h, (N, F_IN), jnp.float32)  # scatter-transform output
    params = init_params(k_p, num_classes=1)
    prepped = prepare_params(params)                      # one-time cast/fold

    # Small tile (8 rows) so the demo exercises multiple grid steps.
    embedding, output = scatternet_forward(h, prepped, tile_n=8)
    jax.block_until_ready((embedding, output))

    assert embedding.shape == (N, EMB)
    assert output.shape == (N, 1)

    emb_ref, out_ref = scatternet_reference(h, params)
    assert jnp.allclose(embedding, emb_ref, atol=5e-2, rtol=5e-2)
    assert jnp.allclose(output, out_ref, atol=5e-2, rtol=5e-2)

    print("KERNEL_OK")
</pallas_src>

<mosaic_0001>
module attributes {stable_mosaic.version = 11 : i64} {
  func.func @_scatternet_mlp_kernel(%arg0: i32, %arg1: memref<8x99xf32, #tpu.memory_space<vmem>>, %arg2: memref<99x128xbf16, #tpu.memory_space<vmem>>, %arg3: memref<1x128xf32, #tpu.memory_space<vmem>>, %arg4: memref<128x64xbf16, #tpu.memory_space<vmem>>, %arg5: memref<1x64xf32, #tpu.memory_space<vmem>>, %arg6: memref<64x64xbf16, #tpu.memory_space<vmem>>, %arg7: memref<1x64xf32, #tpu.memory_space<vmem>>, %arg8: memref<64x32xbf16, #tpu.memory_space<vmem>>, %arg9: memref<1x32xf32, #tpu.memory_space<vmem>>, %arg10: memref<64x1xbf16, #tpu.memory_space<vmem>>, %arg11: memref<1x1xf32, #tpu.memory_space<vmem>>, %arg12: memref<8x32xf32, #tpu.memory_space<vmem>>, %arg13: memref<8x1xf32, #tpu.memory_space<vmem>>) attributes {dimension_semantics = [#tpu.dimension_semantics<parallel>], iteration_bounds = array<i64: 3>, scalar_prefetch = 0 : i64, scratch_operands = 0 : i64, tpu.core_type = #tpu.core_type<tc>, window_params = [{transform_indices = @transform_0, window_bounds = array<i64: 8, 99>}, {pipeline_mode = #tpu.pipeline_mode<synchronous>, transform_indices = @transform_1, window_bounds = array<i64: 99, 128>}, {pipeline_mode = #tpu.pipeline_mode<synchronous>, transform_indices = @transform_2, window_bounds = array<i64: 1, 128>}, {pipeline_mode = #tpu.pipeline_mode<synchronous>, transform_indices = @transform_3, window_bounds = array<i64: 128, 64>}, {pipeline_mode = #tpu.pipeline_mode<synchronous>, transform_indices = @transform_4, window_bounds = array<i64: 1, 64>}, {pipeline_mode = #tpu.pipeline_mode<synchronous>, transform_indices = @transform_5, window_bounds = array<i64: 64, 64>}, {pipeline_mode = #tpu.pipeline_mode<synchronous>, transform_indices = @transform_6, window_bounds = array<i64: 1, 64>}, {pipeline_mode = #tpu.pipeline_mode<synchronous>, transform_indices = @transform_7, window_bounds = array<i64: 64, 32>}, {pipeline_mode = #tpu.pipeline_mode<synchronous>, transform_indices = @transform_8, window_bounds = array<i64: 1, 32>}, {pipeline_mode = #tpu.pipeline_mode<synchronous>, transform_indices = @transform_9, window_bounds = array<i64: 64, 1>}, {pipeline_mode = #tpu.pipeline_mode<synchronous>, transform_indices = @transform_10, window_bounds = array<i64: 1, 1>}, {transform_indices = @transform_11, window_bounds = array<i64: 8, 32>}, {transform_indices = @transform_12, window_bounds = array<i64: 8, 1>}]} {
    %c0 = arith.constant 0 : index
    %c0_0 = arith.constant 0 : index
    %0 = vector.load %arg1[%c0, %c0_0] : memref<8x99xf32, #tpu.memory_space<vmem>>, vector<8x99xf32>
    %cst = arith.constant 0.000000e+00 : f32
    %1 = vector.broadcast %cst : f32 to vector<8x99xf32>
    %2 = arith.cmpf ogt, %0, %1 : vector<8x99xf32>
    %cst_1 = arith.constant 0.00999999977 : f32
    %3 = vector.broadcast %cst_1 : f32 to vector<8x99xf32>
    %4 = arith.mulf %3, %0 : vector<8x99xf32>
    %5 = arith.select %2, %0, %4 : vector<8x99xi1>, vector<8x99xf32>
    %6 = arith.truncf %5 : vector<8x99xf32> to vector<8x99xbf16>
    %c0_2 = arith.constant 0 : index
    %c0_3 = arith.constant 0 : index
    %7 = vector.load %arg2[%c0_2, %c0_3] : memref<99x128xbf16, #tpu.memory_space<vmem>>, vector<99x128xbf16>
    %cst_4 = arith.constant dense<0.000000e+00> : vector<8x128xf32>
    %8 = tpu.matmul %6, %7, %cst_4 {dimension_numbers = #tpu.dot_dimension_numbers<[1], [0], [0], [1], [0, 0, 1, 1], [], []>} : vector<8x99xbf16>, vector<99x128xbf16>, vector<8x128xf32> -> vector<8x128xf32>
    %c0_5 = arith.constant 0 : index
    %c0_6 = arith.constant 0 : index
    %9 = vector.load %arg3[%c0_5, %c0_6] : memref<1x128xf32, #tpu.memory_space<vmem>>, vector<1x128xf32>
    %10 = vector.broadcast %9 : vector<1x128xf32> to vector<8x128xf32>
    %11 = arith.addf %8, %10 : vector<8x128xf32>
    %cst_7 = arith.constant 0.000000e+00 : f32
    %12 = vector.broadcast %cst_7 : f32 to vector<8x128xf32>
    %13 = arith.cmpf ogt, %11, %12 : vector<8x128xf32>
    %cst_8 = arith.constant 0.00999999977 : f32
    %14 = vector.broadcast %cst_8 : f32 to vector<8x128xf32>
    %15 = arith.mulf %14, %11 : vector<8x128xf32>
    %16 = arith.select %13, %11, %15 : vector<8x128xi1>, vector<8x128xf32>
    %17 = arith.truncf %16 : vector<8x128xf32> to vector<8x128xbf16>
    %c0_9 = arith.constant 0 : index
    %c0_10 = arith.constant 0 : index
    %18 = vector.load %arg4[%c0_9, %c0_10] : memref<128x64xbf16, #tpu.memory_space<vmem>>, vector<128x64xbf16>
    %cst_11 = arith.constant dense<0.000000e+00> : vector<8x64xf32>
    %19 = tpu.matmul %17, %18, %cst_11 {dimension_numbers = #tpu.dot_dimension_numbers<[1], [0], [0], [1], [0, 0, 1, 1], [], []>} : vector<8x128xbf16>, vector<128x64xbf16>, vector<8x64xf32> -> vector<8x64xf32>
    %c0_12 = arith.constant 0 : index
    %c0_13 = arith.constant 0 : index
    %20 = vector.load %arg5[%c0_12, %c0_13] : memref<1x64xf32, #tpu.memory_space<vmem>>, vector<1x64xf32>
    %21 = vector.broadcast %20 : vector<1x64xf32> to vector<8x64xf32>
    %22 = arith.addf %19, %21 : vector<8x64xf32>
    %cst_14 = arith.constant 0.000000e+00 : f32
    %23 = vector.broadcast %cst_14 : f32 to vector<8x64xf32>
    %24 = arith.cmpf ogt, %22, %23 : vector<8x64xf32>
    %cst_15 = arith.constant 0.00999999977 : f32
    %25 = vector.broadcast %cst_15 : f32 to vector<8x64xf32>
    %26 = arith.mulf %25, %22 : vector<8x64xf32>
    %27 = arith.select %24, %22, %26 : vector<8x64xi1>, vector<8x64xf32>
    %28 = arith.truncf %27 : vector<8x64xf32> to vector<8x64xbf16>
    %c0_16 = arith.constant 0 : index
    %c0_17 = arith.constant 0 : index
    %29 = vector.load %arg6[%c0_16, %c0_17] : memref<64x64xbf16, #tpu.memory_space<vmem>>, vector<64x64xbf16>
    %cst_18 = arith.constant dense<0.000000e+00> : vector<8x64xf32>
    %30 = tpu.matmul %28, %29, %cst_18 {dimension_numbers = #tpu.dot_dimension_numbers<[1], [0], [0], [1], [0, 0, 1, 1], [], []>} : vector<8x64xbf16>, vector<64x64xbf16>, vector<8x64xf32> -> vector<8x64xf32>
    %c0_19 = arith.constant 0 : index
    %c0_20 = arith.constant 0 : index
    %31 = vector.load %arg7[%c0_19, %c0_20] : memref<1x64xf32, #tpu.memory_space<vmem>>, vector<1x64xf32>
    %32 = vector.broadcast %31 : vector<1x64xf32> to vector<8x64xf32>
    %33 = arith.addf %30, %32 : vector<8x64xf32>
    %34 = arith.truncf %33 : vector<8x64xf32> to vector<8x64xbf16>
    %c0_21 = arith.constant 0 : index
    %c0_22 = arith.constant 0 : index
    %35 = vector.load %arg8[%c0_21, %c0_22] : memref<64x32xbf16, #tpu.memory_space<vmem>>, vector<64x32xbf16>
    %cst_23 = arith.constant dense<0.000000e+00> : vector<8x32xf32>
    %36 = tpu.matmul %34, %35, %cst_23 {dimension_numbers = #tpu.dot_dimension_numbers<[1], [0], [0], [1], [0, 0, 1, 1], [], []>} : vector<8x64xbf16>, vector<64x32xbf16>, vector<8x32xf32> -> vector<8x32xf32>
    %c0_24 = arith.constant 0 : index
    %c0_25 = arith.constant 0 : index
    %37 = vector.load %arg9[%c0_24, %c0_25] : memref<1x32xf32, #tpu.memory_space<vmem>>, vector<1x32xf32>
    %38 = vector.broadcast %37 : vector<1x32xf32> to vector<8x32xf32>
    %39 = arith.addf %36, %38 : vector<8x32xf32>
    %40 = arith.truncf %33 : vector<8x64xf32> to vector<8x64xbf16>
    %c0_26 = arith.constant 0 : index
    %c0_27 = arith.constant 0 : index
    %41 = vector.load %arg10[%c0_26, %c0_27] : memref<64x1xbf16, #tpu.memory_space<vmem>>, vector<64x1xbf16>
    %cst_28 = arith.constant dense<0.000000e+00> : vector<8x1xf32>
    %42 = tpu.matmul %40, %41, %cst_28 {dimension_numbers = #tpu.dot_dimension_numbers<[1], [0], [0], [1], [0, 0, 1, 1], [], []>} : vector<8x64xbf16>, vector<64x1xbf16>, vector<8x1xf32> -> vector<8x1xf32>
    %c0_29 = arith.constant 0 : index
    %c0_30 = arith.constant 0 : index
    %43 = vector.load %arg11[%c0_29, %c0_30] : memref<1x1xf32, #tpu.memory_space<vmem>>, vector<1x1xf32>
    %44 = vector.broadcast %43 : vector<1x1xf32> to vector<8x1xf32>
    %45 = arith.addf %42, %44 : vector<8x1xf32>
    %c0_31 = arith.constant 0 : index
    %c0_32 = arith.constant 0 : index
    %46 = vector.load %arg12[%c0_31, %c0_32] : memref<8x32xf32, #tpu.memory_space<vmem>>, vector<8x32xf32>
    tpu.vector_store %arg12[%c0_31, %c0_32], %39 {strides = array<i32>} : memref<8x32xf32, #tpu.memory_space<vmem>>, vector<8x32xf32>,
    %c0_33 = arith.constant 0 : index
    %c0_34 = arith.constant 0 : index
    %47 = vector.load %arg13[%c0_33, %c0_34] : memref<8x1xf32, #tpu.memory_space<vmem>>, vector<8x1xf32>
    tpu.vector_store %arg13[%c0_33, %c0_34], %45 {strides = array<i32>} : memref<8x1xf32, #tpu.memory_space<vmem>>, vector<8x1xf32>,
    return
  }
  func.func @transform_0(%arg0: i32) -> (i32, i32) {
    %c0_i32 = arith.constant 0 : i32
    %c0_i32_0 = arith.constant 0 : i32
    return %arg0, %c0_i32 : i32, i32
  }
  func.func @transform_1(%arg0: i32) -> (i32, i32) {
    %c0_i32 = arith.constant 0 : i32
    %c0_i32_0 = arith.constant 0 : i32
    %c0_i32_1 = arith.constant 0 : i32
    return %c0_i32, %c0_i32_0 : i32, i32
  }
  func.func @transform_2(%arg0: i32) -> (i32, i32) {
    %c0_i32 = arith.constant 0 : i32
    %c0_i32_0 = arith.constant 0 : i32
    %c0_i32_1 = arith.constant 0 : i32
    return %c0_i32, %c0_i32_0 : i32, i32
  }
  func.func @transform_3(%arg0: i32) -> (i32, i32) {
    %c0_i32 = arith.constant 0 : i32
    %c0_i32_0 = arith.constant 0 : i32
    %c0_i32_1 = arith.constant 0 : i32
    return %c0_i32, %c0_i32_0 : i32, i32
  }
  func.func @transform_4(%arg0: i32) -> (i32, i32) {
    %c0_i32 = arith.constant 0 : i32
    %c0_i32_0 = arith.constant 0 : i32
    %c0_i32_1 = arith.constant 0 : i32
    return %c0_i32, %c0_i32_0 : i32, i32
  }
  func.func @transform_5(%arg0: i32) -> (i32, i32) {
    %c0_i32 = arith.constant 0 : i32
    %c0_i32_0 = arith.constant 0 : i32
    %c0_i32_1 = arith.constant 0 : i32
    return %c0_i32, %c0_i32_0 : i32, i32
  }
  func.func @transform_6(%arg0: i32) -> (i32, i32) {
    %c0_i32 = arith.constant 0 : i32
    %c0_i32_0 = arith.constant 0 : i32
    %c0_i32_1 = arith.constant 0 : i32
    return %c0_i32, %c0_i32_0 : i32, i32
  }
  func.func @transform_7(%arg0: i32) -> (i32, i32) {
    %c0_i32 = arith.constant 0 : i32
    %c0_i32_0 = arith.constant 0 : i32
    %c0_i32_1 = arith.constant 0 : i32
    return %c0_i32, %c0_i32_0 : i32, i32
  }
  func.func @transform_8(%arg0: i32) -> (i32, i32) {
    %c0_i32 = arith.constant 0 : i32
    %c0_i32_0 = arith.constant 0 : i32
    %c0_i32_1 = arith.constant 0 : i32
    return %c0_i32, %c0_i32_0 : i32, i32
  }
  func.func @transform_9(%arg0: i32) -> (i32, i32) {
    %c0_i32 = arith.constant 0 : i32
    %c0_i32_0 = arith.constant 0 : i32
    %c0_i32_1 = arith.constant 0 : i32
    return %c0_i32, %c0_i32_0 : i32, i32
  }
  func.func @transform_10(%arg0: i32) -> (i32, i32) {
    %c0_i32 = arith.constant 0 : i32
    %c0_i32_0 = arith.constant 0 : i32
    %c0_i32_1 = arith.constant 0 : i32
    return %c0_i32, %c0_i32_0 : i32, i32
  }
  func.func @transform_11(%arg0: i32) -> (i32, i32) {
    %c0_i32 = arith.constant 0 : i32
    %c0_i32_0 = arith.constant 0 : i32
    return %arg0, %c0_i32 : i32, i32
  }
  func.func @transform_12(%arg0: i32) -> (i32, i32) {
    %c0_i32 = arith.constant 0 : i32
    %c0_i32_0 = arith.constant 0 : i32
    return %arg0, %c0_i32 : i32, i32
  }
}

</mosaic_0001>

<bundles_post_ra>
// kernel: tpu_custom_call.1
= control target key start
LH: loop header
LB: loop body
LE: loop exit
PB: predicated region body
PF: predicated region fallthrough
CT: control target
= control target key end

     0   :  { %s1608_s0 = inlined_call_operand.vmem [shape: f32[24,99], index: 0, kind: input, shape index: {}]   ;;  %s1609_s1 = inlined_call_operand.vmem [shape: bf16[99,128], index: 1, kind: input, shape index: {}]   ;;  %s1610_s2 = inlined_call_operand.vmem [shape: f32[1,128], index: 2, kind: input, shape index: {}]   ;;  %s1611_s3 = inlined_call_operand.vmem [shape: bf16[128,64], index: 3, kind: input, shape index: {}]   ;;  %s1612_s4 = inlined_call_operand.vmem [shape: f32[1,64], index: 4, kind: input, shape index: {}]   ;;  %s1613_s5 = inlined_call_operand.vmem [shape: bf16[64,64], index: 5, kind: input, shape index: {}]   ;;  %s1614_s6 = inlined_call_operand.vmem [shape: f32[1,64], index: 6, kind: input, shape index: {}]   ;;  %s1615_s7 = inlined_call_operand.vmem [shape: bf16[64,32], index: 7, kind: input, shape index: {}]   ;;  %s1616_s8 = inlined_call_operand.vmem [shape: f32[1,32], index: 8, kind: input, shape index: {}]   ;;  %s1617_s9 = inlined_call_operand.vmem [shape: bf16[64,1], index: 9, kind: input, shape index: {}]   ;;  %s1618_s10 = inlined_call_operand.<no memory space> [shape: f32[1,1], index: 10, kind: input, shape index: {}]   ;;  %s1619_s11 = inlined_call_operand.hbm [shape: f32[24,32], index: 11, kind: output, shape index: {0}]   ;;  %s1620_s12 = inlined_call_operand.vmem [shape: f32[24,1], index: 12, kind: output, shape index: {1}]  }
   0x1   :  { %1621 = sst [smem:[#allocation7_spill]] %s1608_s0  ;;  %v18_v0 = vstv %s1618_s10 }
   0x2   :  { %1622 = sst [smem:[#allocation8_spill]] %s1609_s1  ;;  %19 = vst [vmem:[#allocation2] sm:$0x1] %v18_v0 }
   0x3   :  { %1623 = sst [smem:[#allocation9_spill]] %s1610_s2 }
   0x4   :  { %20 = vsyncpa [#allocation4], 0 }
   0x5   :  { %22 = vsyncpa [#allocation4 + $0x1], 0  ;;  %s1366_s23 = smov 0   ;;  %s1368_s24 = smov 0  }
   0x6   :  { %s1370_s25 = smov 0   ;;  %s1372_s26 = smov 0  }
   0x7 LB: > { %s1387_s10 = sadd.s32 4294967295, %s1292_s26   ;;  %s1010_s27 = sadd.s32 4294967294, %s1292_s26   ;;  %s1292_s26 = sphi %s1372_s26, %s1634_s26   ;;  %s1288_s25 = sphi %s1370_s25, %s1633_s25   ;;  %s1284_s24 = sphi %s1368_s24, %s1632_s24   ;;  %s1280_s23 = sphi %s1366_s23, %s1631_s23  }
   0x8   : > { %s1391_s28 = sadd.s32 1, %s1292_s26   ;;  %s271_s29 = sadd.s32 1, %s1288_s25 }
   0x9   : > { %s268_s30 = ssub.s32 %s1292_s26, %s1391_s28  ;;  %p281_p0 = scmp.ne.s32.totalorder %s1288_s25, %s1284_s24 }
   0xa   : > { %p269_p1 = scmp.eq.s32.totalorder %s268_s30, 0  ;;  %p282_p2 = scmp.eq.s32.totalorder %s1387_s10, 2 }
   0xb   : > { %p287_p3 = scmp.ne.s32.totalorder %s1284_s24, %s1280_s23  ;;  %p288_p4 = scmp.eq.s32.totalorder %s1010_s27, 2 }
   0xc   : > { %s1402_s13 = scalar_select %p269_p1, %s1288_s25, %s271_s29  }
   0xd   : > { %p1404_p5 = por %p282_p2, %p281_p0  ;;  %p1408_p6 = por %p288_p4, %p287_p3 }
   0xe   : > { %1624 = sst [smem:[#allocation6_spill]] %s1402_s13  ;;  %p1013_p7 = scmp.ge.s32.totalorder %s1292_s26, 1 }
   0xf   : > { %p369_p8 = scmp.lt.s32.totalorder %s1292_s26, 4 }
  0x11   : > { %p370_p9 = pnand %p1013_p7, %p369_p8 }
  0x12   : > { %s1627_s1 = sld [smem:[#allocation8_spill]] (!%p370_p9)  ;;  %p414_p10 = scmp.lt.s32.totalorder (!%p370_p9), %s1387_s10, 2 }
  0x13   : > { %373 = sbr.rel (%p370_p9) target bundleno = 863 (0x35f), region = 64  ;;  %s1628_s0 = sld [smem:[#allocation7_spill]] (!%p370_p9) }
  0x14   : > { %s1629_s2 = sld [smem:[#allocation9_spill]] (!%p370_p9)  ;;  %s405_s17 = sand.u32 (!%p370_p9), 1, %s1284_s24  }
  0x15   : > { %s1014_s18 = sshll.u32 (!%p370_p9), %s405_s17, 3 }
  0x16   : > { %s407_s22 = scalar_lea.vmem (!%p370_p9), [#allocation3], %s1014_s18 }
  0x17   : > { %s924_s27 = sshll.u32 (!%p370_p9), %s407_s22, 4  ;;  %s1569_s27 = int_to_ptr.vmem [resolvable:$true] %s924_s27 }
  0x18   : > { %v1205_v1 = vld [vmem:[%s1627_s1 + $0x30] ss:$0 sps:$4 sm:$0x33]   ;;  %v1294_v2 = vmov 0.0   ;;  %vm491_vm0 = vcmask 1040384   ;;  %vm492_vm1 = vcmask 1041408  }
  0x19   : > { %1089 = vmatprep.subr.bf16.mxu0 %v1294_v2  ;;  %1107 = vmatprep.subr.bf16.mxu1 %v1294_v2  ;;  %v1295_v3 = vmov 65535   ;;  %v1206_v7 = vld [vmem:[%s1627_s1 + $0x28] sm:$0xff]   ;;  %vm1296_vm2 = vmmov 0   ;;  %s1429_s20 = scalar_select %p414_p10, %s1387_s10, 2  ;;  %v1212_v8 = vld [vmem:[%s1611_s3 + $0x38] sm:$0xff]   ;;  %v1207_v9 = vld [vmem:[%s1627_s1 + $0x20] sm:$0xff]  }
  0x1a   : > { %v493_v4 = vsel %vm491_vm0, 4294967295, %v1295_v3  ;;  %1103 = vmatprep.mubr.msk.bf16.mxu0 %vm1296_vm2, %v1294_v2  ;;  %1123 = vmatprep.mubr.msk.bf16.mxu1 %vm1296_vm2, %v1294_v2  ;;  %v1213_v10 = vld [vmem:[%s1611_s3 + $0x30] sm:$0xff]   ;;  %v1208_v12 = vld [vmem:[%s1627_s1 + $0x18] sm:$0xff]   ;;  %v1214_v13 = vld [vmem:[%s1611_s3 + $0x28] sm:$0xff]   ;;  %vm487_vm4 = vcmask 809984   ;;  %vm696_vm7 = vcmask 523264  }
  0x1b   : > { %v494_v5 = vsel %vm492_vm1, %v493_v4, 0  ;;  %s1015_s30 = sshll.u32 %s1429_s20, 3  ;;  %1108 = vmatpush3.bf16.msra.mxu1 %v1212_v8  ;;  %v1209_v15 = vld [vmem:[%s1627_s1 + $0x10] sm:$0xff]   ;;  %v1215_v16 = vld [vmem:[%s1611_s3 + $0x20] sm:$0xff]   ;;  %v1210_v17 = vld [vmem:[%s1627_s1 + $0x8] sm:$0xff]   ;;  %vm904_vm8 = vcmask 7168  }
  0x1c   : > { %v496_v6 = vand.u32 %v1205_v1, %v494_v5  ;;  %s417_s21 = scalar_lea.vmem %s1628_s0, %s1015_s30  ;;  %1109 = vmatprep.subr.bf16.mxu1 %v1294_v2  ;;  %v1216_v18 = vld [vmem:[%s1611_s3 + $0x18] sm:$0xff]   ;;  %v1211_v19 = vld [vmem:[%s1627_s1] sm:$0xff]   ;;  %v1217_v21 = vld [vmem:[%s1611_s3 + $0x10] sm:$0xff]   ;;  %s421_s0 = scalar_lea.vmem %s1620_s12, %s1015_s30  ;;  %vm902_vm9 = vcmask 261120  }
  0x1d   : > { %v423_v11 = vld [vmem:[%s417_s21] sm:$0xff]  ;;  %v1218_v23 = vld [vmem:[%s1611_s3 + $0x8] sm:$0xff]   ;;  %v1220_v25 = vld [vmem:[%s1613_s5 + $0x18] sm:$0xff]   ;;  %s1054_s21 = sshll.u32 %s1387_s10, 7  ;;  %s907_s10 = scalar_lea.sflag [#allocation4], %s405_s17 }
  0x1e   : > { %1090 = vmatpush3.bf16.msra.mxu0 %v496_v6  ;;  %v425_v14 = vmul.f32 0.01, %v423_v11  ;;  %vm424_vm3 = vcmp.gt.f32.partialorder %v423_v11, 0.0  ;;  %v1219_v24 = vld [vmem:[%s1611_s3] sm:$0xff]   ;;  %v1221_v26 = vld [vmem:[%s1613_s5 + $0x10] sm:$0xff]   ;;  %v1222_v36 = vld [vmem:[%s1613_s5 + $0x8] sm:$0xff]   ;;  %s1567_s19 = scalar_lea.hbm %s1619_s11, %s1054_s21 }
  0x1f   : > { %1091 = vmatprep.subr.bf16.mxu0 %v1294_v2  ;;  %1110 = vmatpush3.bf16.msra.mxu1 %v1213_v10  ;;  %v1017_v27 = vld [vmem:[%s1629_s2] ss:$0 sm:$0xff]  ;;  %v1224_v38 = vld [vmem:[%s1615_s7 + $0x18] sm:$0xff]   ;;  %v1226_v39 = vld [vmem:[%s1615_s7 + $0x10] sm:$0xff]   ;;  %s1232_s20 = scalar_lea.vmem %s1569_s27, 128  ;;  %s1297_s1 = smov [#allocation3]  }
  0x20   : > { %1111 = vmatprep.subr.bf16.mxu1 %v1294_v2  ;;  %v426_v20 = vsel %vm424_vm3, %v423_v11, %v425_v14  ;;  %v1223_v37 = vld [vmem:[%s1613_s5] sm:$0xff]   ;;  %v1228_v40 = vld [vmem:[%s1615_s7 + $0x8] sm:$0xff]   ;;  %v1225_v48 = vld [vmem:[%s1617_s9 + $0x18] sm:$0xff]   ;;  %p1233_p11 = scmp.ne.s32.totalorder %s1569_s27, %s1232_s20  ;;  %s1236_s2 = sshll.u32 %s1297_s1, 4  ;;  %s1237_s2 = int_to_ptr.vmem [resolvable:$false] %s1236_s2 }
  0x21   : > { %v427_v22 = vpack.c.bf16 %v426_v20, %v426_v20  ;;  %v1026_v41 = vld [vmem:[%s1612_s4] ss:$0 sm:$0xff]  ;;  %v1227_v51 = vld [vmem:[%s1617_s9 + $0x10] sm:$0xff]   ;;  %v1229_v52 = vld [vmem:[%s1617_s9 + $0x8] sm:$0xff]   ;;  %s1238_s30 = scalar_lea.vmem %s1237_s2, 256  ;;  %p1239_p0 = scmp.lt.s32.totalorder %s1569_s27, %s1237_s2 }
  0x22   : > { %1092 = vmatpush3.bf16.msra.mxu0 %v1206_v7  ;;  %v1230_v53 = vld [vmem:[%s1615_s7] sm:$0xff]   ;;  %p1234_p12 = pnand %p1233_p11, %p1404_p5  ;;  %p1240_p1 = scmp.lt.s32.totalorder %s1238_s30, %s1232_s20 }
  0x23   : > { %1093 = vmatprep.subr.bf16.mxu0 %v1294_v2  ;;  %1112 = vmatpush3.bf16.msra.mxu1 %v1214_v13  ;;  %v1231_v54 = vld [vmem:[%s1617_s9] sm:$0xff]  }
  0x24   : > { %1113 = vmatprep.subr.bf16.mxu1 %v1294_v2  ;;  %v1035_v55 = vld [vmem:[%s1614_s6] ss:$0 sm:$0xff]  ;;  %p1235_p13 = pneg %p1234_p12  ;;  %p1241_p2 = por %p1240_p1, %p1239_p0 }
  0x25   : > { %v1041_v62 = vld [vmem:[%s1616_s8] ss:$0 sm:$0xff] }
  0x26   : > { %1094 = vmatpush3.bf16.msra.mxu0 %v1207_v9  ;;  %v1047_v63 = vld [vmem:[#allocation2] ss:$0 sm:$0xff]  ;;  %p1242_p3 = pnand %p1241_p2, %p1235_p13 }
  0x27   : > { %1095 = vmatprep.subr.bf16.mxu0 %v1294_v2  ;;  %1114 = vmatpush3.bf16.msra.mxu1 %v1215_v16 }
  0x28   : > { %1115 = vmatprep.subr.bf16.mxu1 %v1294_v2 }
  0x2a   : > { %1096 = vmatpush3.bf16.msra.mxu0 %v1208_v12 }
  0x2b   : > { %1097 = vmatprep.subr.bf16.mxu0 %v1294_v2  ;;  %1116 = vmatpush3.bf16.msra.mxu1 %v1216_v18 }
  0x2c   : > { %1117 = vmatprep.subr.bf16.mxu1 %v1294_v2 }
  0x2e   : > { %1098 = vmatpush3.bf16.msra.mxu0 %v1209_v15 }
  0x2f   : > { %1099 = vmatprep.subr.bf16.mxu0 %v1294_v2  ;;  %1118 = vmatpush3.bf16.msra.mxu1 %v1217_v21 }
  0x30   : > { %1119 = vmatprep.subr.bf16.mxu1 %v1294_v2 }
  0x32   : > { %1100 = vmatpush3.bf16.msra.mxu0 %v1210_v17 }
  0x33   : > { %1101 = vmatprep.subr.bf16.mxu0 %v1294_v2  ;;  %1120 = vmatpush3.bf16.msra.mxu1 %v1218_v23 }
  0x34   : > { %1121 = vmatprep.subr.bf16.mxu1 %v1294_v2 }
  0x36   : > { %1102 = vmatpush3.bf16.msra.mxu0 %v1211_v19 }
  0x37   : > { %1127 = vmatprep.subr.bf16.mxu0 %v1294_v2  ;;  %1122 = vmatpush3.bf16.msra.mxu1 %v1219_v24 }
  0x38   : > { %1139 = vmatprep.subr.bf16.mxu1 %v1294_v2 }
  0x39   : > { %1104 = vmatmul.mubr.msk.bf16.vlgmr.msra.gmra.mxu0 %vm487_vm4, %v427_v22 }
  0x3a   : > { %1135 = vmatprep.mubr.msk.bf16.mxu0 %vm1296_vm2, %v1294_v2  ;;  %1128 = vmatpush3.bf16.msra.mxu0 %v1220_v25 }
  0x3b   : > { %1129 = vmatprep.subr.bf16.mxu0 %v1294_v2 }
  0x3e   : > { %1130 = vmatpush3.bf16.msra.mxu0 %v1221_v26 }
  0x3f   : > { %1131 = vmatprep.subr.bf16.mxu0 %v1294_v2 }
  0x42   : > { %1132 = vmatpush3.bf16.msra.mxu0 %v1222_v36 }
  0x43   : > { %1133 = vmatprep.subr.bf16.mxu0 %v1294_v2 }
  0x46   : > { %1134 = vmatpush3.bf16.msra.mxu0 %v1223_v37 }
  0x47   : > { %1151 = vmatprep.subr.bf16.mxu0 %v1294_v2 }
  0xf9   : > { %v532_v28 = vpop.f32.mrf.mxu0 }
  0xfa   : > { %v533_v29 = vadd.f32 %v1017_v27, %v532_v28 }
  0xfb   : > { %v1105_v30 = vpop.f32.mrf.mxu0 }
  0xfc   : > { %vm538_vm5 = vcmp.gt.f32.partialorder %v533_v29, 0.0  ;;  %v539_v31 = vmul.f32 0.01, %v533_v29 }
  0xfd   : > { %v535_v32 = vpop.f32.mrf.mxu0 }
  0xfe   : > { %v540_v33 = vsel %vm538_vm5, %v533_v29, %v539_v31 }
  0xff   : > { %v1106_v34 = vpop.f32.mrf.mxu0  ;;  %v541_v35 = vpack.c.bf16 %v540_v33, %v540_v33 }
 0x101   : > { %1124 = vmatmul.mubr.bf16.vlgmr.msra.gmra.mxu1 %v541_v35 }
 0x102   : > { %1147 = vmatprep.mubr.msk.bf16.mxu1 %vm1296_vm2, %v1294_v2  ;;  %1140 = vmatpush3.bf16.msra.mxu1 %v1224_v38 }
 0x103   : > { %1141 = vmatprep.subr.bf16.mxu1 %v1294_v2 }
 0x106   : > { %1142 = vmatpush3.bf16.msra.mxu1 %v1226_v39 }
 0x107   : > { %1143 = vmatprep.subr.bf16.mxu1 %v1294_v2 }
 0x10a   : > { %1144 = vmatpush3.bf16.msra.mxu1 %v1228_v40 }
 0x10b   : > { %1145 = vmatprep.subr.bf16.mxu1 %v1294_v2 }
 0x10e   : > { %1146 = vmatpush3.bf16.msra.mxu1 %v1230_v53 }
 0x1c1   : > { %v647_v42 = vpop.f32.mrf.mxu1 }
 0x1c2   : > { %v648_v43 = vadd.f32 %v1026_v41, %v647_v42 }
 0x1c3   : > { %v1125_v44 = vpop.f32.mrf.mxu1 }
 0x1c4   : > { %vm653_vm6 = vcmp.gt.f32.partialorder %v648_v43, 0.0  ;;  %v654_v45 = vmul.f32 0.01, %v648_v43 }
 0x1c5   : > { %v650_v46 = vpop.f32.mrf.mxu1 }
 0x1c6   : > { %v655_v47 = vsel %vm653_vm6, %v648_v43, %v654_v45 }
 0x1c7   : > { %v656_v49 = vpack.c.bf16 %v655_v47, %v655_v47  ;;  %v1126_v50 = vpop.f32.mrf.mxu1 }
 0x1c9   : > { %1136 = vmatmul.mubr.msk.bf16.vlgmr.msra.gmra.mxu0 %vm696_vm7, %v656_v49 }
 0x1ca   : > { %1152 = vmatpush3.bf16.msra.mxu0 %v1225_v48  ;;  %1159 = vmatprep.mubr.msk.bf16.mxu0 %vm1296_vm2, %v1294_v2 }
 0x1cb   : > { %1153 = vmatprep.subr.bf16.mxu0 %v1294_v2 }
 0x1ce   : > { %1154 = vmatpush3.bf16.msra.mxu0 %v1227_v51 }
 0x1cf   : > { %1155 = vmatprep.subr.bf16.mxu0 %v1294_v2 }
 0x1d2   : > { %1156 = vmatpush3.bf16.msra.mxu0 %v1229_v52 }
 0x1d3   : > { %1157 = vmatprep.subr.bf16.mxu0 %v1294_v2 }
 0x1d6   : > { %1158 = vmatpush3.bf16.msra.mxu0 %v1231_v54 }
 0x289   : > { %v734_v56 = vpop.f32.mrf.mxu0 }
 0x28a   : > { %v735_v57 = vadd.f32 %v1035_v55, %v734_v56 }
 0x28b   : > { %v1137_v58 = vpop.f32.mrf.mxu0 }
 0x28c   : > { %v740_v59 = vpack.c.bf16 %v735_v57, %v735_v57 }
 0x28d   : > { %v737_v60 = vpop.f32.mrf.mxu0 }
 0x28e   : > { %1148 = vmatmul.mubr.msk.bf16.vlgmr.msra.gmra.mxu1 %vm696_vm7, %v740_v59  ;;  %1160 = vmatmul.mubr.msk.bf16.vlgmr.msra.gmra.mxu0 %vm696_vm7, %v740_v59 }
 0x28f   : > { %v1138_v61 = vpop.f32.mrf.mxu0 }
 0x34e   : > { %v817_v0 = vpop.f32.mrf.mxu1  ;;  %v896_v1 = vpop.f32.mrf.mxu0 }
 0x34f   : > { %v818_v2 = vadd.f32 %v1041_v62, %v817_v0  ;;  %v897_v3 = vadd.f32 %v1047_v63, %v896_v1 }
 0x350   : > { %v1149_v4 = vpop.f32.mrf.mxu1  ;;  %v1161_v5 = vpop.f32.mrf.mxu0 }
 0x351   : > { %905 = vst.msk [vmem:[%s421_s0] sm:$0xff] %vm904_vm8, %v897_v3 }
 0x352   : > { %903 = vst.msk [vmem:[%s407_s22] sm:$0xff] %vm902_vm9, %v818_v2  ;;  %v820_v6 = vpop.f32.mrf.mxu1  ;;  %v899_v7 = vpop.f32.mrf.mxu0 }
 0x353   : > { %1245 = shalt.err (!%p1242_p3)
}
 0x354   : > { %s1246_s0 = scalar_lea.hbm %s1567_s19, 128  ;;  %s1250_s13 = scalar_lea.hbm %s1619_s11, 384 }
 0x355   : > { %p1247_p4 = scmp.ne.s32.totalorder %s1567_s19, %s1246_s0  ;;  %p1251_p9 = scmp.lt.s32.totalorder %s1567_s19, %s1619_s11 }
 0x356   : > { %p1252_p10 = scmp.lt.s32.totalorder %s1250_s13, %s1246_s0 }
 0x357   : > { %p1248_p7 = pnand %p1247_p4, %p1404_p5 }
 0x358   : > { %p1253_p11 = por %p1252_p10, %p1251_p9 }
 0x359   : > { %p1249_p8 = pneg %p1248_p7 }
 0x35b   : > { %p1254_p12 = pnand %p1253_p11, %p1249_p8 }
 0x35d   : > { %1257 = shalt.err (!%p1254_p12)
}
 0x35e   : > { %1163 = dma.vmem_to_hbm [thread:$0]  (%p1404_p5), %s1569_s27, 128, %s1567_s19, %s907_s10   ;;  %v1150_v8 = vpop.f32.mrf.mxu1  ;;  %v1162_v9 = vpop.f32.mrf.mxu0 }
 0x35f PF: > { %p1169_p13 = scmp.ge.s32.totalorder %s1292_s26, 2  ;;  %s939_s29 = sand.u32 1, %s1280_s23  }
 0x360   : > { %s940_s16 = scalar_lea.sflag [#allocation4], %s939_s29 }
 0x361   : > { %p1166_p0 = pnand %p1169_p13, %p1408_p6 }
 0x363   : > { %p1167_p1 = pneg %p1166_p0 }
 0x365   : > { %1275 = dma.done.wait (%p1167_p1), %s940_s16, 128  }
 0x366   : > { %1277 = vsyncadd (%p1167_p1), %s940_s16, 4294967168  ;;  %s1630_s14 = sld [smem:[#allocation6_spill]]  ;;  %p25_p5 = scmp.ge.s32.totalorder %s1391_s28, 5  }
 0x367   : > { %s1631_s23 = smov %s1284_s24  ;;  %s1632_s24 = smov %s1288_s25 }
 0x368   : > { %s1634_s26 = smov %s1391_s28  ;;  %27 = sbr.rel (!%p25_p5) target bundleno = 7 (0x7), region = 111 }
 0x36c   : > { %s1633_s25 = smov %s1630_s14 }
 0x36d   :  { %952 = vsyncpa [#allocation4], 1 }
 0x36e   :  { %954 = vsyncpa [#allocation4 + $0x1], 1 }

</bundles_post_ra>
